<compile_context>
chip_gen: v6e
topology: v6e:2x2x1
jax: 0.10.0
libtpu: 0.0.40
codegen_flags: <defaults>
</compile_context>

<pallas_src>
import math

import jax
import jax.numpy as jnp
from jax import lax
from jax.experimental import pallas as pl
from jax.experimental.pallas import tpu as pltpu

# ----------------------- small shapes consistent with the module -----------------------
B = 2                      # batch
C_IN = 4                   # in_channels
C_OUT = 32                 # out_channels
H_IN, W_IN = 8, 16         # in_shape  = (nlat_in, nlon_in)
H_OUT, W_OUT = 8, 8        # out_shape = (nlat_out, nlon_out)
KERNEL_SHAPE = (2, 2)
K = KERNEL_SHAPE[0] * KERNEL_SHAPE[1]   # number of filter-basis functions
PSCALE = W_IN // W_OUT                  # longitude stride of the DISCO contraction
LN_EPS = 1e-5

CHW = C_IN * H_IN * W_IN    # 512  (GEMM contraction depth)
HC = H_OUT * C_OUT          # 256  (lane-dense output width)
ROWS = B * W_OUT            # 16   (output rows)


def _compute_cutoff_radius(nlat, kernel_shape, basis_type):
    theta_cutoff_factor = {'piecewise linear': 0.5, 'morlet': 0.5, 'zernike': math.sqrt(2.0)}
    return (kernel_shape[0] + 1) * theta_cutoff_factor[basis_type] * math.pi / float(nlat - 1)


# --------------------------------- Pallas kernel ---------------------------------------
def _patch_merge_kernel(xg_ref, wb_ref, avg_ref, gamma_ref, beta_ref, out_ref):
    # layout:
    #   xg_ref    : (B*W_OUT, C_IN*H_IN*W_IN) = (16, 512)  rolled input, row=(b,wo), col=(c,hi,wi)
    #   wb_ref    : (C_IN*H_IN*W_IN, H_OUT*C_OUT) = (512, 256)  psi (x) conv-weight folded GEMM operand
    #   avg_ref   : (256, 256) block-diagonal group-average operator (1/C_OUT within each ho block)
    #   gamma_ref : (1, 256), beta_ref : (1, 256)  LayerNorm affine params tiled over ho
    #   out_ref   : (16, 256)  rows=(b,wo), lanes=(ho, c_out)  -> lane-dense, unmasked stores

    # single fused GEMM: DISCO S2 conv for every (b, wo, ho, c_out) at once
    z = jnp.dot(xg_ref[...], wb_ref[...], preferred_element_type=jnp.float32)    # (16, 256)

    # fused LayerNorm over the C_OUT channels of each ho lane-group, done full-width via a
    # block-diagonal averaging matmul (broadcast mean/var back across the group for free).
    mean = jnp.dot(z, avg_ref[...], preferred_element_type=jnp.float32)          # (16, 256)
    zc = z - mean
    var = jnp.dot(zc * zc, avg_ref[...], preferred_element_type=jnp.float32)     # (16, 256)
    normed = zc * lax.rsqrt(var + LN_EPS)
    out_ref[...] = (normed * gamma_ref[...] + beta_ref[...]).astype(out_ref.dtype)


def overlap_patch_merging(x, psi, weight, ln_weight, ln_bias):
    """x: (B, C_IN, H_IN, W_IN) NCHW -> (B, C_OUT, H_OUT, W_OUT) NCHW."""
    in_dtype = x.dtype
    xf = x.astype(jnp.float32)                                   # conv always runs in f32

    # rolled-input slab for ALL output longitudes at once: xg[(b,wo),(c,hi,wi)]
    idx = (jnp.arange(W_IN)[None, :] + jnp.arange(W_OUT)[:, None] * PSCALE) % W_IN  # (W_OUT, W_IN)
    xg = xf[:, :, :, idx]                                        # (B, C_IN, H_IN, W_OUT, W_IN)
    xg = jnp.transpose(xg, (0, 3, 1, 2, 4)).reshape(ROWS, CHW)   # (16, 512)

    # fold the precomputed DISCO filter tensor psi with the conv weight into one GEMM operand:
    #   wbig[(c,hi,wi),(ho,o)] = sum_k psi[k,ho,hi,wi] * weight[o,c,k]
    wbig = jnp.einsum('kniw,ock->ciwno',
                      psi.astype(jnp.float32), weight.astype(jnp.float32),
                      precision=lax.Precision.HIGHEST).reshape(CHW, HC)          # (512, 256)

    # block-diagonal group-average operator for the per-ho LayerNorm over C_OUT lanes
    avg = jnp.kron(jnp.eye(H_OUT, dtype=jnp.float32),
                   jnp.full((C_OUT, C_OUT), 1.0 / C_OUT, dtype=jnp.float32))     # (256, 256)

    gamma = jnp.tile(ln_weight.astype(jnp.float32), (H_OUT,)).reshape(1, HC)
    beta = jnp.tile(ln_bias.astype(jnp.float32), (H_OUT,)).reshape(1, HC)

    out2d = pl.pallas_call(
        _patch_merge_kernel,
        out_shape=jax.ShapeDtypeStruct((ROWS, HC), jnp.float32),
        grid_spec=pltpu.PrefetchScalarGridSpec(
            num_scalar_prefetch=0,
            grid=(1,),                                           # single step: no grid overhead
            in_specs=[
                pl.BlockSpec((ROWS, CHW), lambda i: (0, 0)),
                pl.BlockSpec((CHW, HC), lambda i: (0, 0)),
                pl.BlockSpec((HC, HC), lambda i: (0, 0)),
                pl.BlockSpec((1, HC), lambda i: (0, 0)),
                pl.BlockSpec((1, HC), lambda i: (0, 0)),
            ],
            out_specs=pl.BlockSpec((ROWS, HC), lambda i: (0, 0)),
        ),
        compiler_params=pltpu.CompilerParams(dimension_semantics=("arbitrary",)),
    )(xg, wbig, avg, gamma, beta)

    # (B*W_OUT, H_OUT*C_OUT) -> (B, C_OUT, H_OUT, W_OUT)
    out = out2d.reshape(B, W_OUT, H_OUT, C_OUT).transpose(0, 3, 2, 1)
    return out.astype(in_dtype)


# ----------------------- deterministic parameter / psi construction --------------------
def _make_psi():
    # Dense version of the precomputed DISCO convolution tensor psi[k, ho, hi, wi]
    # (defined at output longitude phi_out = 0; other longitudes are handled by rolling).
    # TODO(synk): the exact torch_harmonics morlet filter-basis values / quadrature
    # normalization are not reproduced; psi here is a deterministic smooth basis with the
    # same theta_cutoff sparsity structure and sin(theta) quadrature weighting.
    theta_cutoff = _compute_cutoff_radius(H_OUT, KERNEL_SHAPE, 'morlet')
    theta_in = jnp.linspace(0.0, math.pi, H_IN)
    theta_out = jnp.linspace(0.0, math.pi, H_OUT)
    phi_in = jnp.arange(W_IN) * (2.0 * math.pi / W_IN)
    ct = (jnp.cos(theta_out)[:, None, None] * jnp.cos(theta_in)[None, :, None]
          + jnp.sin(theta_out)[:, None, None] * jnp.sin(theta_in)[None, :, None]
          * jnp.cos(phi_in)[None, None, :])
    dist = jnp.arccos(jnp.clip(ct, -1.0, 1.0))                       # (H_OUT, H_IN, W_IN)
    quad = jnp.sin(theta_in)[None, :, None] * (math.pi / H_IN) * (2.0 * math.pi / W_IN)
    mask = (dist <= theta_cutoff).astype(jnp.float32)
    ks = jnp.arange(K, dtype=jnp.float32)[:, None, None, None]
    r = dist[None] / theta_cutoff
    basis = jnp.cos(ks * math.pi * r + 0.3 * ks) * (1.0 - r)
    return (basis * mask[None] * quad[None]).astype(jnp.float32)     # (K, H_OUT, H_IN, W_IN)


# ----------------------------------- pure-JAX reference ---------------------------------
def _reference(x, psi, weight, ln_w, ln_b):
    xf = x.astype(jnp.float32)
    wi = jnp.arange(W_IN)
    wo = jnp.arange(W_OUT)
    idx = (wi[None, :] + wo[:, None] * PSCALE) % W_IN                # (W_OUT, W_IN)
    xg = xf[:, :, :, idx]                                            # (B, C, H_IN, W_OUT, W_IN)
    y = jnp.einsum('khiw,bcinw->bckhn', psi, xg, precision=lax.Precision.HIGHEST)
    z = jnp.einsum('bckhn,ock->bohn', y, weight, precision=lax.Precision.HIGHEST)
    zp = jnp.transpose(z, (0, 2, 3, 1))                              # (B, H_OUT, W_OUT, C_OUT)
    mean = zp.mean(-1, keepdims=True)
    var = ((zp - mean) ** 2).mean(-1, keepdims=True)
    zn = (zp - mean) / jnp.sqrt(var + LN_EPS) * ln_w + ln_b
    return jnp.transpose(zn, (0, 3, 1, 2)).astype(x.dtype)


if __name__ == "__main__":
    key = jax.random.PRNGKey(0)
    kx, kw = jax.random.split(key)
    x = jax.random.normal(kx, (B, C_IN, H_IN, W_IN), dtype=jnp.float32)
    weight = 0.1 * jax.random.normal(kw, (C_OUT, C_IN, K), dtype=jnp.float32)
    ln_weight = jnp.ones((C_OUT,), jnp.float32)    # nn.init.constant_(m.weight, 1.0)
    ln_bias = jnp.zeros((C_OUT,), jnp.float32)     # nn.init.constant_(m.bias, 0)
    psi = _make_psi()

    out = overlap_patch_merging(x, psi, weight, ln_weight, ln_bias)
    out = jax.block_until_ready(out)
    assert out.shape == (B, C_OUT, H_OUT, W_OUT), out.shape

    ref = _reference(x, psi, weight, ln_weight, ln_bias)
    if not bool(jnp.allclose(out, ref, atol=2e-3, rtol=2e-3)):
        raise AssertionError("Pallas kernel does not match reference")
    print("KERNEL_OK")
</pallas_src>

<mosaic_0001>
module attributes {stable_mosaic.version = 11 : i64} {
  func.func @_patch_merge_kernel(%arg0: i32, %arg1: memref<16x512xf32, #tpu.memory_space<vmem>>, %arg2: memref<512x256xf32, #tpu.memory_space<vmem>>, %arg3: memref<256x256xf32, #tpu.memory_space<vmem>>, %arg4: memref<1x256xf32, #tpu.memory_space<vmem>>, %arg5: memref<1x256xf32, #tpu.memory_space<vmem>>, %arg6: memref<16x256xf32, #tpu.memory_space<vmem>>) attributes {dimension_semantics = [#tpu.dimension_semantics<arbitrary>], iteration_bounds = array<i64: 1>, scalar_prefetch = 0 : i64, scratch_operands = 0 : i64, tpu.core_type = #tpu.core_type<tc>, window_params = [{pipeline_mode = #tpu.pipeline_mode<synchronous>, transform_indices = @transform_0, window_bounds = array<i64: 16, 512>}, {pipeline_mode = #tpu.pipeline_mode<synchronous>, transform_indices = @transform_1, window_bounds = array<i64: 512, 256>}, {pipeline_mode = #tpu.pipeline_mode<synchronous>, transform_indices = @transform_2, window_bounds = array<i64: 256, 256>}, {pipeline_mode = #tpu.pipeline_mode<synchronous>, transform_indices = @transform_3, window_bounds = array<i64: 1, 256>}, {pipeline_mode = #tpu.pipeline_mode<synchronous>, transform_indices = @transform_4, window_bounds = array<i64: 1, 256>}, {pipeline_mode = #tpu.pipeline_mode<synchronous>, transform_indices = @transform_5, window_bounds = array<i64: 16, 256>}]} {
    %c0 = arith.constant 0 : index
    %c0_0 = arith.constant 0 : index
    %0 = vector.load %arg1[%c0, %c0_0] : memref<16x512xf32, #tpu.memory_space<vmem>>, vector<16x512xf32>
    %c0_1 = arith.constant 0 : index
    %c0_2 = arith.constant 0 : index
    %1 = vector.load %arg2[%c0_1, %c0_2] : memref<512x256xf32, #tpu.memory_space<vmem>>, vector<512x256xf32>
    %cst = arith.constant dense<0.000000e+00> : vector<16x256xf32>
    %2 = tpu.matmul %0, %1, %cst {dimension_numbers = #tpu.dot_dimension_numbers<[1], [0], [0], [1], [0, 0, 1, 1], [], []>} : vector<16x512xf32>, vector<512x256xf32>, vector<16x256xf32> -> vector<16x256xf32>
    %c0_3 = arith.constant 0 : index
    %c0_4 = arith.constant 0 : index
    %3 = vector.load %arg3[%c0_3, %c0_4] : memref<256x256xf32, #tpu.memory_space<vmem>>, vector<256x256xf32>
    %cst_5 = arith.constant dense<0.000000e+00> : vector<16x256xf32>
    %4 = tpu.matmul %2, %3, %cst_5 {dimension_numbers = #tpu.dot_dimension_numbers<[1], [0], [0], [1], [0, 0, 1, 1], [], []>} : vector<16x256xf32>, vector<256x256xf32>, vector<16x256xf32> -> vector<16x256xf32>
    %5 = arith.subf %2, %4 : vector<16x256xf32>
    %6 = arith.mulf %5, %5 : vector<16x256xf32>
    %c0_6 = arith.constant 0 : index
    %c0_7 = arith.constant 0 : index
    %7 = vector.load %arg3[%c0_6, %c0_7] : memref<256x256xf32, #tpu.memory_space<vmem>>, vector<256x256xf32>
    %cst_8 = arith.constant dense<0.000000e+00> : vector<16x256xf32>
    %8 = tpu.matmul %6, %7, %cst_8 {dimension_numbers = #tpu.dot_dimension_numbers<[1], [0], [0], [1], [0, 0, 1, 1], [], []>} : vector<16x256xf32>, vector<256x256xf32>, vector<16x256xf32> -> vector<16x256xf32>
    %cst_9 = arith.constant 9.99999974E-6 : f32
    %9 = vector.broadcast %cst_9 : f32 to vector<16x256xf32>
    %10 = arith.addf %8, %9 : vector<16x256xf32>
    %11 = math.rsqrt %10 : vector<16x256xf32>
    %12 = arith.mulf %5, %11 : vector<16x256xf32>
    %c0_10 = arith.constant 0 : index
    %c0_11 = arith.constant 0 : index
    %13 = vector.load %arg4[%c0_10, %c0_11] : memref<1x256xf32, #tpu.memory_space<vmem>>, vector<1x256xf32>
    %14 = vector.broadcast %13 : vector<1x256xf32> to vector<16x256xf32>
    %15 = arith.mulf %12, %14 : vector<16x256xf32>
    %c0_12 = arith.constant 0 : index
    %c0_13 = arith.constant 0 : index
    %16 = vector.load %arg5[%c0_12, %c0_13] : memref<1x256xf32, #tpu.memory_space<vmem>>, vector<1x256xf32>
    %17 = vector.broadcast %16 : vector<1x256xf32> to vector<16x256xf32>
    %18 = arith.addf %15, %17 : vector<16x256xf32>
    %c0_14 = arith.constant 0 : index
    %c0_15 = arith.constant 0 : index
    %19 = vector.load %arg6[%c0_14, %c0_15] : memref<16x256xf32, #tpu.memory_space<vmem>>, vector<16x256xf32>
    tpu.vector_store %arg6[%c0_14, %c0_15], %18 {strides = array<i32>} : memref<16x256xf32, #tpu.memory_space<vmem>>, vector<16x256xf32>,
    return
  }
  func.func @transform_0(%arg0: i32) -> (i32, i32) {
    %c0_i32 = arith.constant 0 : i32
    %c0_i32_0 = arith.constant 0 : i32
    %c0_i32_1 = arith.constant 0 : i32
    return %c0_i32, %c0_i32_0 : i32, i32
  }
  func.func @transform_1(%arg0: i32) -> (i32, i32) {
    %c0_i32 = arith.constant 0 : i32
    %c0_i32_0 = arith.constant 0 : i32
    %c0_i32_1 = arith.constant 0 : i32
    return %c0_i32, %c0_i32_0 : i32, i32
  }
  func.func @transform_2(%arg0: i32) -> (i32, i32) {
    %c0_i32 = arith.constant 0 : i32
    %c0_i32_0 = arith.constant 0 : i32
    %c0_i32_1 = arith.constant 0 : i32
    return %c0_i32, %c0_i32_0 : i32, i32
  }
  func.func @transform_3(%arg0: i32) -> (i32, i32) {
    %c0_i32 = arith.constant 0 : i32
    %c0_i32_0 = arith.constant 0 : i32
    %c0_i32_1 = arith.constant 0 : i32
    return %c0_i32, %c0_i32_0 : i32, i32
  }
  func.func @transform_4(%arg0: i32) -> (i32, i32) {
    %c0_i32 = arith.constant 0 : i32
    %c0_i32_0 = arith.constant 0 : i32
    %c0_i32_1 = arith.constant 0 : i32
    return %c0_i32, %c0_i32_0 : i32, i32
  }
  func.func @transform_5(%arg0: i32) -> (i32, i32) {
    %c0_i32 = arith.constant 0 : i32
    %c0_i32_0 = arith.constant 0 : i32
    %c0_i32_1 = arith.constant 0 : i32
    return %c0_i32, %c0_i32_0 : i32, i32
  }
}

</mosaic_0001>

<bundles_post_ra>
// kernel: tpu_custom_call.1
= control target key start
LH: loop header
LB: loop body
LE: loop exit
PB: predicated region body
PF: predicated region fallthrough
CT: control target
= control target key end

     0   :  { %10 = vsyncpa [#allocation3], 0  ;;  %s807_s0 = inlined_call_operand.hbm [shape: f32[16,512], index: 0, kind: input, shape index: {}]   ;;  %s808_s1 = inlined_call_operand.hbm [shape: f32[512,256], index: 1, kind: input, shape index: {}]   ;;  %s809_s2 = inlined_call_operand.hbm [shape: f32[256,256], index: 2, kind: input, shape index: {}]   ;;  %s810_s3 = inlined_call_operand.vmem [shape: f32[1,256], index: 3, kind: input, shape index: {}]   ;;  %s811_s4 = inlined_call_operand.vmem [shape: f32[1,256], index: 4, kind: input, shape index: {}]   ;;  %s812_s5 = inlined_call_operand.hbm [shape: f32[16,256], index: 5, kind: output, shape index: {}]  }
   0x1   :  { %11 = vsyncpa [#allocation6], 0 }
   0x2   :  { %12 = vsyncpa [#allocation4], 0  ;;  %s742_s18 = smov [#allocation5]  }
   0x3   :  { %s30_s19 = sshll.u32 %s742_s18, 4  ;;  %s31_s19 = int_to_ptr.vmem [resolvable:$true] %s30_s19 }
   0x4   :  { %s664_s20 = scalar_lea.vmem %s31_s19, 16384  ;;  %p669_p1 = scmp.lt.s32.totalorder %s31_s19, %s31_s19 }
   0x5   :  { %p665_p0 = scmp.ne.s32.totalorder %s31_s19, %s664_s20  ;;  %p670_p2 = scmp.lt.s32.totalorder %s664_s20, %s664_s20 }
   0x7   :  { %p671_p3 = por %p670_p2, %p669_p1 }
   0x9   :  { %p672_p4 = pnand %p671_p3, %p665_p0 }
   0xb   :  { %675 = shalt.err (!%p672_p4)
}
   0xc   :  { %s743_s21 = smov 256   ;;  %s744_s22 = smov 16  }
   0xd   :  { %36 = dma.hbm_to_vmem [thread:$0]  %s808_s1, 16384, %s31_s19, [#allocation6], %s743_s21, %s743_s21, %s744_s22  }
   0xe   :  { %s745_s25 = smov [#allocation2]  }
   0xf   :  { %s18_s26 = sshll.u32 %s745_s25, 4  ;;  %s19_s26 = int_to_ptr.vmem [resolvable:$true] %s18_s26 }
  0x10   :  { %s684_s27 = scalar_lea.vmem %s19_s26, 1024  ;;  %p689_p6 = scmp.lt.s32.totalorder %s19_s26, %s19_s26 }
  0x11   :  { %p685_p5 = scmp.ne.s32.totalorder %s19_s26, %s684_s27  ;;  %p690_p7 = scmp.lt.s32.totalorder %s684_s27, %s684_s27 }
  0x13   :  { %p691_p8 = por %p690_p7, %p689_p6 }
  0x15   :  { %p692_p9 = pnand %p691_p8, %p685_p5 }
  0x17   :  { %695 = shalt.err (!%p692_p9)
}
  0x18   :  { %s746_s28 = smov 512   ;;  %s747_s29 = smov 32  }
  0x19   :  { %24 = dma.hbm_to_vmem [thread:$0]  %s807_s0, 1024, %s19_s26, [#allocation3], %s746_s28, %s746_s28, %s747_s29  }
  0x1a   :  { %s748_s7 = smov [#allocation7]  }
  0x1b   :  { %s42_s8 = sshll.u32 %s748_s7, 4  ;;  %s43_s8 = int_to_ptr.vmem [resolvable:$true] %s42_s8 }
  0x1c   :  { %s704_s1 = scalar_lea.vmem %s43_s8, 8192  ;;  %p709_p11 = scmp.lt.s32.totalorder %s43_s8, %s43_s8 }
  0x1d   :  { %p705_p10 = scmp.ne.s32.totalorder %s43_s8, %s704_s1  ;;  %p710_p12 = scmp.lt.s32.totalorder %s704_s1, %s704_s1 }
  0x1f   :  { %p711_p13 = por %p710_p12, %p709_p11 }
  0x21   :  { %p712_p0 = pnand %p711_p13, %p705_p10 }
  0x23   :  { %715 = shalt.err (!%p712_p0)
}
  0x24   :  { %48 = dma.hbm_to_vmem [thread:$0]  %s809_s2, 8192, %s43_s8, [#allocation6], %s743_s21, %s743_s21, %s744_s22  }
  0x25   :  { %736 = dma.done.wait [#allocation3], 1024  }
  0x26   :  { %737 = vsyncadd [#allocation3], 4294966272 }
  0x27   :  { %738 = dma.done.wait [#allocation6], 24576  }
  0x28   :  { %739 = vsyncadd [#allocation6], 4294942720  ;;  %v101_v0 = vld [vmem:[#allocation5 + $0xf8] sm:$0xff]  ;;  %v100_v2 = vld [vmem:[#allocation5 + $0xf0] sm:$0xff] }
  0x29   :  { %v165_v1 = vld [vmem:[#allocation5 + $0x2f8] sm:$0xff]  ;;  %198 = vmatprep.subr.mxu0 %v101_v0  ;;  %v164_v3 = vld [vmem:[#allocation5 + $0x2f0] sm:$0xff]  ;;  %v99_v4 = vld [vmem:[#allocation5 + $0xe8] sm:$0xff] }
  0x2a   :  { %275 = vmatprep.subr.mxu1 %v165_v1  ;;  %v163_v5 = vld [vmem:[#allocation5 + $0x2e8] sm:$0xff]  ;;  %199 = vmatpush1.msra.mxu0 %v100_v2  ;;  %v98_v6 = vld [vmem:[#allocation5 + $0xe0] sm:$0xff]  ;;  %v97_v8 = vld [vmem:[#allocation5 + $0xd8] sm:$0xff] }
  0x2b   :  { %276 = vmatpush1.msra.mxu1 %v164_v3  ;;  %v162_v7 = vld [vmem:[#allocation5 + $0x2e0] sm:$0xff]  ;;  %200 = vmatprep.subr.mxu0 %v99_v4  ;;  %v161_v9 = vld [vmem:[#allocation5 + $0x2d8] sm:$0xff]  ;;  %v96_v10 = vld [vmem:[#allocation5 + $0xd0] sm:$0xff] }
  0x2c   :  { %277 = vmatprep.subr.mxu1 %v163_v5  ;;  %v160_v11 = vld [vmem:[#allocation5 + $0x2d0] sm:$0xff]  ;;  %201 = vmatpush1.msra.mxu0 %v98_v6  ;;  %v95_v12 = vld [vmem:[#allocation5 + $0xc8] sm:$0xff]  ;;  %v94_v14 = vld [vmem:[#allocation5 + $0xc0] sm:$0xff] }
  0x2d   :  { %278 = vmatpush1.msra.mxu1 %v162_v7  ;;  %v159_v13 = vld [vmem:[#allocation5 + $0x2c8] sm:$0xff]  ;;  %202 = vmatprep.subr.mxu0 %v97_v8  ;;  %v158_v15 = vld [vmem:[#allocation5 + $0x2c0] sm:$0xff]  ;;  %v93_v16 = vld [vmem:[#allocation5 + $0xb8] sm:$0xff] }
  0x2e   :  { %279 = vmatprep.subr.mxu1 %v161_v9  ;;  %203 = vmatpush1.msra.mxu0 %v96_v10  ;;  %v157_v17 = vld [vmem:[#allocation5 + $0x2b8] sm:$0xff]  ;;  %v92_v18 = vld [vmem:[#allocation5 + $0xb0] sm:$0xff]  ;;  %v91_v20 = vld [vmem:[#allocation5 + $0xa8] sm:$0xff] }
  0x2f   :  { %280 = vmatpush1.msra.mxu1 %v160_v11  ;;  %204 = vmatprep.subr.mxu0 %v95_v12  ;;  %v156_v19 = vld [vmem:[#allocation5 + $0x2b0] sm:$0xff]  ;;  %v155_v21 = vld [vmem:[#allocation5 + $0x2a8] sm:$0xff]  ;;  %v90_v22 = vld [vmem:[#allocation5 + $0xa0] sm:$0xff] }
  0x30   :  { %281 = vmatprep.subr.mxu1 %v159_v13  ;;  %205 = vmatpush1.msra.mxu0 %v94_v14  ;;  %v154_v23 = vld [vmem:[#allocation5 + $0x2a0] sm:$0xff]  ;;  %v89_v24 = vld [vmem:[#allocation5 + $0x98] sm:$0xff]  ;;  %v88_v26 = vld [vmem:[#allocation5 + $0x90] sm:$0xff] }
  0x31   :  { %282 = vmatpush1.msra.mxu1 %v158_v15  ;;  %206 = vmatprep.subr.mxu0 %v93_v16  ;;  %v153_v25 = vld [vmem:[#allocation5 + $0x298] sm:$0xff]  ;;  %v152_v27 = vld [vmem:[#allocation5 + $0x290] sm:$0xff]  ;;  %v87_v28 = vld [vmem:[#allocation5 + $0x88] sm:$0xff] }
  0x32   :  { %283 = vmatprep.subr.mxu1 %v157_v17  ;;  %207 = vmatpush1.msra.mxu0 %v92_v18  ;;  %v151_v29 = vld [vmem:[#allocation5 + $0x288] sm:$0xff]  ;;  %v86_v30 = vld [vmem:[#allocation5 + $0x80] sm:$0xff]  ;;  %v85_v32 = vld [vmem:[#allocation5 + $0x78] sm:$0xff] }
  0x33   :  { %284 = vmatpush1.msra.mxu1 %v156_v19  ;;  %208 = vmatprep.subr.mxu0 %v91_v20  ;;  %v150_v31 = vld [vmem:[#allocation5 + $0x280] sm:$0xff]  ;;  %v149_v33 = vld [vmem:[#allocation5 + $0x278] sm:$0xff]  ;;  %v84_v34 = vld [vmem:[#allocation5 + $0x70] sm:$0xff] }
  0x34   :  { %285 = vmatprep.subr.mxu1 %v155_v21  ;;  %209 = vmatpush1.msra.mxu0 %v90_v22  ;;  %v148_v35 = vld [vmem:[#allocation5 + $0x270] sm:$0xff]  ;;  %v83_v36 = vld [vmem:[#allocation5 + $0x68] sm:$0xff]  ;;  %v82_v38 = vld [vmem:[#allocation5 + $0x60] sm:$0xff] }
  0x35   :  { %286 = vmatpush1.msra.mxu1 %v154_v23  ;;  %210 = vmatprep.subr.mxu0 %v89_v24  ;;  %v147_v37 = vld [vmem:[#allocation5 + $0x268] sm:$0xff]  ;;  %v146_v39 = vld [vmem:[#allocation5 + $0x260] sm:$0xff]  ;;  %v81_v40 = vld [vmem:[#allocation5 + $0x58] sm:$0xff] }
  0x36   :  { %287 = vmatprep.subr.mxu1 %v153_v25  ;;  %211 = vmatpush1.msra.mxu0 %v88_v26  ;;  %v145_v41 = vld [vmem:[#allocation5 + $0x258] sm:$0xff]  ;;  %v80_v42 = vld [vmem:[#allocation5 + $0x50] sm:$0xff]  ;;  %v79_v44 = vld [vmem:[#allocation5 + $0x48] sm:$0xff] }
  0x37   :  { %288 = vmatpush1.msra.mxu1 %v152_v27  ;;  %212 = vmatprep.subr.mxu0 %v87_v28  ;;  %v144_v43 = vld [vmem:[#allocation5 + $0x250] sm:$0xff]  ;;  %v143_v45 = vld [vmem:[#allocation5 + $0x248] sm:$0xff]  ;;  %v78_v46 = vld [vmem:[#allocation5 + $0x40] sm:$0xff] }
  0x38   :  { %289 = vmatprep.subr.mxu1 %v151_v29  ;;  %213 = vmatpush1.msra.mxu0 %v86_v30  ;;  %v142_v47 = vld [vmem:[#allocation5 + $0x240] sm:$0xff]  ;;  %v77_v48 = vld [vmem:[#allocation5 + $0x38] sm:$0xff]  ;;  %v76_v50 = vld [vmem:[#allocation5 + $0x30] sm:$0xff] }
  0x39   :  { %290 = vmatpush1.msra.mxu1 %v150_v31  ;;  %214 = vmatprep.subr.mxu0 %v85_v32  ;;  %v141_v49 = vld [vmem:[#allocation5 + $0x238] sm:$0xff]  ;;  %v140_v51 = vld [vmem:[#allocation5 + $0x230] sm:$0xff]  ;;  %v75_v52 = vld [vmem:[#allocation5 + $0x28] sm:$0xff] }
  0x3a   :  { %291 = vmatprep.subr.mxu1 %v149_v33  ;;  %215 = vmatpush1.msra.mxu0 %v84_v34  ;;  %v139_v53 = vld [vmem:[#allocation5 + $0x228] sm:$0xff]  ;;  %v74_v54 = vld [vmem:[#allocation5 + $0x20] sm:$0xff]  ;;  %v73_v56 = vld [vmem:[#allocation5 + $0x18] sm:$0xff] }
  0x3b   :  { %292 = vmatpush1.msra.mxu1 %v148_v35  ;;  %216 = vmatprep.subr.mxu0 %v83_v36  ;;  %v138_v55 = vld [vmem:[#allocation5 + $0x220] sm:$0xff]  ;;  %v137_v57 = vld [vmem:[#allocation5 + $0x218] sm:$0xff]  ;;  %v72_v58 = vld [vmem:[#allocation5 + $0x10] sm:$0xff] }
  0x3c   :  { %293 = vmatprep.subr.mxu1 %v147_v37  ;;  %217 = vmatpush1.msra.mxu0 %v82_v38  ;;  %v136_v59 = vld [vmem:[#allocation5 + $0x210] sm:$0xff]  ;;  %v71_v60 = vld [vmem:[#allocation5 + $0x8] sm:$0xff]  ;;  %v70_v62 = vld [vmem:[#allocation5] sm:$0xff] }
  0x3d   :  { %294 = vmatpush1.msra.mxu1 %v146_v39  ;;  %218 = vmatprep.subr.mxu0 %v81_v40  ;;  %v135_v61 = vld [vmem:[#allocation5 + $0x208] sm:$0xff]  ;;  %v134_v63 = vld [vmem:[#allocation5 + $0x200] sm:$0xff]  ;;  %v133_v0 = vld [vmem:[#allocation5 + $0x1f8] sm:$0xff] }
  0x3e   :  { %295 = vmatprep.subr.mxu1 %v145_v41  ;;  %219 = vmatpush1.msra.mxu0 %v80_v42  ;;  %v197_v1 = vld [vmem:[#allocation5 + $0x3f8] sm:$0xff]  ;;  %v132_v2 = vld [vmem:[#allocation5 + $0x1f0] sm:$0xff]  ;;  %v131_v4 = vld [vmem:[#allocation5 + $0x1e8] sm:$0xff] }
  0x3f   :  { %296 = vmatpush1.msra.mxu1 %v144_v43  ;;  %220 = vmatprep.subr.mxu0 %v79_v44  ;;  %v196_v3 = vld [vmem:[#allocation5 + $0x3f0] sm:$0xff]  ;;  %v195_v5 = vld [vmem:[#allocation5 + $0x3e8] sm:$0xff]  ;;  %v130_v6 = vld [vmem:[#allocation5 + $0x1e0] sm:$0xff] }
  0x40   :  { %297 = vmatprep.subr.mxu1 %v143_v45  ;;  %221 = vmatpush1.msra.mxu0 %v78_v46  ;;  %v194_v7 = vld [vmem:[#allocation5 + $0x3e0] sm:$0xff]  ;;  %v129_v8 = vld [vmem:[#allocation5 + $0x1d8] sm:$0xff]  ;;  %v128_v10 = vld [vmem:[#allocation5 + $0x1d0] sm:$0xff] }
  0x41   :  { %298 = vmatpush1.msra.mxu1 %v142_v47  ;;  %222 = vmatprep.subr.mxu0 %v77_v48  ;;  %v193_v9 = vld [vmem:[#allocation5 + $0x3d8] sm:$0xff]  ;;  %v192_v11 = vld [vmem:[#allocation5 + $0x3d0] sm:$0xff]  ;;  %v127_v12 = vld [vmem:[#allocation5 + $0x1c8] sm:$0xff] }
  0x42   :  { %299 = vmatprep.subr.mxu1 %v141_v49  ;;  %223 = vmatpush1.msra.mxu0 %v76_v50  ;;  %v191_v13 = vld [vmem:[#allocation5 + $0x3c8] sm:$0xff]  ;;  %v126_v14 = vld [vmem:[#allocation5 + $0x1c0] sm:$0xff]  ;;  %v125_v16 = vld [vmem:[#allocation5 + $0x1b8] sm:$0xff] }
  0x43   :  { %300 = vmatpush1.msra.mxu1 %v140_v51  ;;  %224 = vmatprep.subr.mxu0 %v75_v52  ;;  %v190_v15 = vld [vmem:[#allocation5 + $0x3c0] sm:$0xff]  ;;  %v189_v17 = vld [vmem:[#allocation5 + $0x3b8] sm:$0xff]  ;;  %v124_v18 = vld [vmem:[#allocation5 + $0x1b0] sm:$0xff] }
  0x44   :  { %301 = vmatprep.subr.mxu1 %v139_v53  ;;  %225 = vmatpush1.msra.mxu0 %v74_v54  ;;  %v188_v19 = vld [vmem:[#allocation5 + $0x3b0] sm:$0xff]  ;;  %v123_v20 = vld [vmem:[#allocation5 + $0x1a8] sm:$0xff]  ;;  %v122_v22 = vld [vmem:[#allocation5 + $0x1a0] sm:$0xff] }
  0x45   :  { %302 = vmatpush1.msra.mxu1 %v138_v55  ;;  %226 = vmatprep.subr.mxu0 %v73_v56  ;;  %v187_v21 = vld [vmem:[#allocation5 + $0x3a8] sm:$0xff]  ;;  %v186_v23 = vld [vmem:[#allocation5 + $0x3a0] sm:$0xff]  ;;  %v121_v24 = vld [vmem:[#allocation5 + $0x198] sm:$0xff] }
  0x46   :  { %303 = vmatprep.subr.mxu1 %v137_v57  ;;  %227 = vmatpush1.msra.mxu0 %v72_v58  ;;  %v185_v25 = vld [vmem:[#allocation5 + $0x398] sm:$0xff]  ;;  %v120_v26 = vld [vmem:[#allocation5 + $0x190] sm:$0xff]  ;;  %v119_v28 = vld [vmem:[#allocation5 + $0x188] sm:$0xff] }
  0x47   :  { %304 = vmatpush1.msra.mxu1 %v136_v59  ;;  %228 = vmatprep.subr.mxu0 %v71_v60  ;;  %v184_v27 = vld [vmem:[#allocation5 + $0x390] sm:$0xff]  ;;  %v183_v29 = vld [vmem:[#allocation5 + $0x388] sm:$0xff]  ;;  %v118_v30 = vld [vmem:[#allocation5 + $0x180] sm:$0xff] }
  0x48   :  { %305 = vmatprep.subr.mxu1 %v135_v61  ;;  %229 = vmatpush1.msra.mxu0 %v70_v62  ;;  %v182_v31 = vld [vmem:[#allocation5 + $0x380] sm:$0xff]  ;;  %v117_v32 = vld [vmem:[#allocation5 + $0x178] sm:$0xff]  ;;  %v116_v34 = vld [vmem:[#allocation5 + $0x170] sm:$0xff] }
  0x49   :  { %306 = vmatpush1.msra.mxu1 %v134_v63  ;;  %230 = vmatprep.subr.mxu0 %v133_v0  ;;  %v181_v33 = vld [vmem:[#allocation5 + $0x378] sm:$0xff]  ;;  %v180_v35 = vld [vmem:[#allocation5 + $0x370] sm:$0xff]  ;;  %v115_v36 = vld [vmem:[#allocation5 + $0x168] sm:$0xff] }
  0x4a   :  { %307 = vmatprep.subr.mxu1 %v197_v1  ;;  %231 = vmatpush2.msra.mxu0 %v132_v2  ;;  %v179_v37 = vld [vmem:[#allocation5 + $0x368] sm:$0xff]  ;;  %v114_v38 = vld [vmem:[#allocation5 + $0x160] sm:$0xff]  ;;  %v113_v40 = vld [vmem:[#allocation5 + $0x158] sm:$0xff] }
  0x4b   :  { %308 = vmatpush2.msra.mxu1 %v196_v3  ;;  %232 = vmatprep.subr.mxu0 %v131_v4  ;;  %v178_v39 = vld [vmem:[#allocation5 + $0x360] sm:$0xff]  ;;  %v177_v41 = vld [vmem:[#allocation5 + $0x358] sm:$0xff]  ;;  %v112_v42 = vld [vmem:[#allocation5 + $0x150] sm:$0xff] }
  0x4c   :  { %309 = vmatprep.subr.mxu1 %v195_v5  ;;  %233 = vmatpush2.msra.mxu0 %v130_v6  ;;  %v176_v43 = vld [vmem:[#allocation5 + $0x350] sm:$0xff]  ;;  %v111_v44 = vld [vmem:[#allocation5 + $0x148] sm:$0xff]  ;;  %v110_v46 = vld [vmem:[#allocation5 + $0x140] sm:$0xff] }
  0x4d   :  { %310 = vmatpush2.msra.mxu1 %v194_v7  ;;  %234 = vmatprep.subr.mxu0 %v129_v8  ;;  %v175_v45 = vld [vmem:[#allocation5 + $0x348] sm:$0xff]  ;;  %v174_v47 = vld [vmem:[#allocation5 + $0x340] sm:$0xff]  ;;  %v109_v48 = vld [vmem:[#allocation5 + $0x138] sm:$0xff] }
  0x4e   :  { %311 = vmatprep.subr.mxu1 %v193_v9  ;;  %235 = vmatpush2.msra.mxu0 %v128_v10  ;;  %v173_v49 = vld [vmem:[#allocation5 + $0x338] sm:$0xff]  ;;  %v108_v50 = vld [vmem:[#allocation5 + $0x130] sm:$0xff]  ;;  %v107_v52 = vld [vmem:[#allocation5 + $0x128] sm:$0xff] }
  0x4f   :  { %312 = vmatpush2.msra.mxu1 %v192_v11  ;;  %236 = vmatprep.subr.mxu0 %v127_v12  ;;  %v172_v51 = vld [vmem:[#allocation5 + $0x330] sm:$0xff]  ;;  %v171_v53 = vld [vmem:[#allocation5 + $0x328] sm:$0xff]  ;;  %v106_v54 = vld [vmem:[#allocation5 + $0x120] sm:$0xff] }
  0x50   :  { %313 = vmatprep.subr.mxu1 %v191_v13  ;;  %237 = vmatpush2.msra.mxu0 %v126_v14  ;;  %v170_v55 = vld [vmem:[#allocation5 + $0x320] sm:$0xff]  ;;  %v105_v56 = vld [vmem:[#allocation5 + $0x118] sm:$0xff]  ;;  %v104_v58 = vld [vmem:[#allocation5 + $0x110] sm:$0xff] }
  0x51   :  { %314 = vmatpush2.msra.mxu1 %v190_v15  ;;  %238 = vmatprep.subr.mxu0 %v125_v16  ;;  %v169_v57 = vld [vmem:[#allocation5 + $0x318] sm:$0xff]  ;;  %v168_v59 = vld [vmem:[#allocation5 + $0x310] sm:$0xff]  ;;  %v103_v60 = vld [vmem:[#allocation5 + $0x108] sm:$0xff] }
  0x52   :  { %315 = vmatprep.subr.mxu1 %v189_v17  ;;  %239 = vmatpush2.msra.mxu0 %v124_v18  ;;  %v167_v61 = vld [vmem:[#allocation5 + $0x308] sm:$0xff]  ;;  %v102_v62 = vld [vmem:[#allocation5 + $0x100] sm:$0xff]  ;;  %v65_v1 = vld [vmem:[#allocation2 + $0x18] sm:$0xff] }
  0x53   :  { %316 = vmatpush2.msra.mxu1 %v188_v19  ;;  %240 = vmatprep.subr.mxu0 %v123_v20  ;;  %v63_v63 = vld [vmem:[#allocation2 + $0x8] sm:$0xff]  ;;  %v166_v0 = vld [vmem:[#allocation5 + $0x300] sm:$0xff]  ;;  %v64_v3 = vld [vmem:[#allocation2 + $0x10] sm:$0xff] }
  0x54   :  { %317 = vmatprep.subr.mxu1 %v187_v21  ;;  %241 = vmatpush2.msra.mxu0 %v122_v22  ;;  %v62_v2 = vld [vmem:[#allocation2] sm:$0xff]  ;;  %v67_v4 = vld [vmem:[#allocation2 + $0x28] sm:$0xff]  ;;  %v69_v5 = vld [vmem:[#allocation2 + $0x38] sm:$0xff] }
  0x55   :  { %318 = vmatpush2.msra.mxu1 %v186_v23  ;;  %242 = vmatprep.subr.mxu0 %v121_v24  ;;  %v383_v6 = vld [vmem:[#allocation7 + $0xf8] sm:$0xff]  ;;  %v382_v7 = vld [vmem:[#allocation7 + $0xf0] sm:$0xff]  ;;  %v66_v8 = vld [vmem:[#allocation2 + $0x20] sm:$0xff] }
  0x56   :  { %319 = vmatprep.subr.mxu1 %v185_v25  ;;  %243 = vmatpush2.msra.mxu0 %v120_v26  ;;  %v68_v9 = vld [vmem:[#allocation2 + $0x30] sm:$0xff]  ;;  %v381_v10 = vld [vmem:[#allocation7 + $0xe8] sm:$0xff]  ;;  %v380_v11 = vld [vmem:[#allocation7 + $0xe0] sm:$0xff] }
  0x57   :  { %320 = vmatpush2.msra.mxu1 %v184_v27  ;;  %244 = vmatprep.subr.mxu0 %v119_v28  ;;  %v379_v12 = vld [vmem:[#allocation7 + $0xd8] sm:$0xff]  ;;  %v378_v13 = vld [vmem:[#allocation7 + $0xd0] sm:$0xff]  ;;  %v377_v14 = vld [vmem:[#allocation7 + $0xc8] sm:$0xff] }
  0x58   :  { %321 = vmatprep.subr.mxu1 %v183_v29  ;;  %245 = vmatpush2.msra.mxu0 %v118_v30  ;;  %v376_v15 = vld [vmem:[#allocation7 + $0xc0] sm:$0xff]  ;;  %v375_v16 = vld [vmem:[#allocation7 + $0xb8] sm:$0xff]  ;;  %v374_v17 = vld [vmem:[#allocation7 + $0xb0] sm:$0xff] }
  0x59   :  { %322 = vmatpush2.msra.mxu1 %v182_v31  ;;  %246 = vmatprep.subr.mxu0 %v117_v32  ;;  %v373_v18 = vld [vmem:[#allocation7 + $0xa8] sm:$0xff]  ;;  %v372_v19 = vld [vmem:[#allocation7 + $0xa0] sm:$0xff]  ;;  %v371_v20 = vld [vmem:[#allocation7 + $0x98] sm:$0xff] }
  0x5a   :  { %323 = vmatprep.subr.mxu1 %v181_v33  ;;  %247 = vmatpush2.msra.mxu0 %v116_v34  ;;  %v370_v21 = vld [vmem:[#allocation7 + $0x90] sm:$0xff]  ;;  %v369_v22 = vld [vmem:[#allocation7 + $0x88] sm:$0xff]  ;;  %v368_v23 = vld [vmem:[#allocation7 + $0x80] sm:$0xff] }
  0x5b   :  { %324 = vmatpush2.msra.mxu1 %v180_v35  ;;  %248 = vmatprep.subr.mxu0 %v115_v36  ;;  %v367_v24 = vld [vmem:[#allocation7 + $0x78] sm:$0xff]  ;;  %v366_v25 = vld [vmem:[#allocation7 + $0x70] sm:$0xff]  ;;  %v365_v26 = vld [vmem:[#allocation7 + $0x68] sm:$0xff] }
  0x5c   :  { %325 = vmatprep.subr.mxu1 %v179_v37  ;;  %249 = vmatpush2.msra.mxu0 %v114_v38  ;;  %v364_v27 = vld [vmem:[#allocation7 + $0x60] sm:$0xff]  ;;  %v363_v28 = vld [vmem:[#allocation7 + $0x58] sm:$0xff]  ;;  %v362_v29 = vld [vmem:[#allocation7 + $0x50] sm:$0xff] }
  0x5d   :  { %326 = vmatpush2.msra.mxu1 %v178_v39  ;;  %250 = vmatprep.subr.mxu0 %v113_v40  ;;  %v361_v30 = vld [vmem:[#allocation7 + $0x48] sm:$0xff]  ;;  %v360_v31 = vld [vmem:[#allocation7 + $0x40] sm:$0xff]  ;;  %v359_v32 = vld [vmem:[#allocation7 + $0x38] sm:$0xff] }
  0x5e   :  { %327 = vmatprep.subr.mxu1 %v177_v41  ;;  %251 = vmatpush2.msra.mxu0 %v112_v42  ;;  %v358_v33 = vld [vmem:[#allocation7 + $0x30] sm:$0xff]  ;;  %v357_v34 = vld [vmem:[#allocation7 + $0x28] sm:$0xff]  ;;  %v356_v35 = vld [vmem:[#allocation7 + $0x20] sm:$0xff] }
  0x5f   :  { %328 = vmatpush2.msra.mxu1 %v176_v43  ;;  %252 = vmatprep.subr.mxu0 %v111_v44  ;;  %v355_v36 = vld [vmem:[#allocation7 + $0x18] sm:$0xff]  ;;  %v354_v37 = vld [vmem:[#allocation7 + $0x10] sm:$0xff]  ;;  %v353_v38 = vld [vmem:[#allocation7 + $0x8] sm:$0xff] }
  0x60   :  { %329 = vmatprep.subr.mxu1 %v175_v45  ;;  %253 = vmatpush2.msra.mxu0 %v110_v46  ;;  %v352_v39 = vld [vmem:[#allocation7] sm:$0xff]  ;;  %v415_v40 = vld [vmem:[#allocation7 + $0x1f8] sm:$0xff]  ;;  %v414_v41 = vld [vmem:[#allocation7 + $0x1f0] sm:$0xff] }
  0x61   :  { %330 = vmatpush2.msra.mxu1 %v174_v47  ;;  %254 = vmatprep.subr.mxu0 %v109_v48  ;;  %v413_v42 = vld [vmem:[#allocation7 + $0x1e8] sm:$0xff]  ;;  %v412_v43 = vld [vmem:[#allocation7 + $0x1e0] sm:$0xff]  ;;  %v411_v44 = vld [vmem:[#allocation7 + $0x1d8] sm:$0xff] }
  0x62   :  { %331 = vmatprep.subr.mxu1 %v173_v49  ;;  %255 = vmatpush2.msra.mxu0 %v108_v50  ;;  %v410_v45 = vld [vmem:[#allocation7 + $0x1d0] sm:$0xff]  ;;  %v409_v46 = vld [vmem:[#allocation7 + $0x1c8] sm:$0xff]  ;;  %v408_v47 = vld [vmem:[#allocation7 + $0x1c0] sm:$0xff] }
  0x63   :  { %332 = vmatpush2.msra.mxu1 %v172_v51  ;;  %256 = vmatprep.subr.mxu0 %v107_v52  ;;  %v407_v48 = vld [vmem:[#allocation7 + $0x1b8] sm:$0xff]  ;;  %v406_v49 = vld [vmem:[#allocation7 + $0x1b0] sm:$0xff]  ;;  %v405_v50 = vld [vmem:[#allocation7 + $0x1a8] sm:$0xff] }
  0x64   :  { %333 = vmatprep.subr.mxu1 %v171_v53  ;;  %257 = vmatpush2.msra.mxu0 %v106_v54  ;;  %v404_v51 = vld [vmem:[#allocation7 + $0x1a0] sm:$0xff]  ;;  %v403_v52 = vld [vmem:[#allocation7 + $0x198] sm:$0xff]  ;;  %v402_v53 = vld [vmem:[#allocation7 + $0x190] sm:$0xff] }
  0x65   :  { %334 = vmatpush2.msra.mxu1 %v170_v55  ;;  %258 = vmatprep.subr.mxu0 %v105_v56  ;;  %v401_v54 = vld [vmem:[#allocation7 + $0x188] sm:$0xff]  ;;  %v400_v55 = vld [vmem:[#allocation7 + $0x180] sm:$0xff]  ;;  %v399_v56 = vld [vmem:[#allocation7 + $0x178] sm:$0xff] }
  0x66   :  { %335 = vmatprep.subr.mxu1 %v169_v57  ;;  %259 = vmatpush2.msra.mxu0 %v104_v58  ;;  %v398_v57 = vld [vmem:[#allocation7 + $0x170] sm:$0xff]  ;;  %v397_v58 = vld [vmem:[#allocation7 + $0x168] sm:$0xff] }
  0x67   :  { %336 = vmatpush2.msra.mxu1 %v168_v59  ;;  %260 = vmatprep.subr.mxu0 %v103_v60  ;;  %v396_v59 = vld [vmem:[#allocation7 + $0x160] sm:$0xff]  ;;  %v395_v60 = vld [vmem:[#allocation7 + $0x158] sm:$0xff] }
  0x68   :  { %337 = vmatprep.subr.mxu1 %v167_v61  ;;  %261 = vmatpush2.msra.mxu0 %v102_v62  ;;  %v394_v61 = vld [vmem:[#allocation7 + $0x150] sm:$0xff]  ;;  %v393_v62 = vld [vmem:[#allocation7 + $0x148] sm:$0xff] }
  0x69   :  { %262 = vmatprep.mubr.f32.mxu0 %v63_v63  ;;  %338 = vmatpush2.msra.mxu1 %v166_v0  ;;  %v392_v63 = vld [vmem:[#allocation7 + $0x140] sm:$0xff]  ;;  %v391_v0 = vld [vmem:[#allocation7 + $0x138] sm:$0xff] }
  0x6a   :  { %339 = vmatprep.mubr.f32.mxu1 %v65_v1  ;;  %263 = vmatmul.mubr.f32.vlgmr.msra.gmra.mxu0 %v62_v2  ;;  %v390_v1 = vld [vmem:[#allocation7 + $0x130] sm:$0xff]  ;;  %v389_v2 = vld [vmem:[#allocation7 + $0x128] sm:$0xff] }
  0x6b   :  { %340 = vmatmul.mubr.f32.vlgmr.msra.gmra.mxu1 %v64_v3  ;;  %268 = vmatprep.mubr.f32.mxu0 %v67_v4  ;;  %v388_v3 = vld [vmem:[#allocation7 + $0x120] sm:$0xff]  ;;  %v387_v4 = vld [vmem:[#allocation7 + $0x118] sm:$0xff] }
  0x6c   :  { %345 = vmatprep.mubr.f32.mxu1 %v69_v5  ;;  %416 = vmatprep.subr.mxu0 %v383_v6  ;;  %v386_v5 = vld [vmem:[#allocation7 + $0x110] sm:$0xff] }
  0x6d   :  { %501 = vmatprep.subr.mxu1 %v383_v6  ;;  %417 = vmatpush1.msra.mxu0 %v382_v7  ;;  %v385_v6 = vld [vmem:[#allocation7 + $0x108] sm:$0xff] }
  0x6e   :  { %502 = vmatpush1.msra.mxu1 %v382_v7  ;;  %269 = vmatmul.mubr.f32.gmra.mxu0 %v66_v8  ;;  %v384_v7 = vld [vmem:[#allocation7 + $0x100] sm:$0xff] }
  0x6f   :  { %346 = vmatmul.mubr.f32.gmra.mxu1 %v68_v9  ;;  %418 = vmatprep.subr.mxu0 %v381_v10 }
  0x70   :  { %503 = vmatprep.subr.mxu1 %v381_v10  ;;  %419 = vmatpush1.msra.mxu0 %v380_v11 }
  0x71   :  { %504 = vmatpush1.msra.mxu1 %v380_v11  ;;  %420 = vmatprep.subr.mxu0 %v379_v12 }
  0x72   :  { %505 = vmatprep.subr.mxu1 %v379_v12  ;;  %421 = vmatpush1.msra.mxu0 %v378_v13 }
  0x73   :  { %506 = vmatpush1.msra.mxu1 %v378_v13  ;;  %422 = vmatprep.subr.mxu0 %v377_v14 }
  0x74   :  { %507 = vmatprep.subr.mxu1 %v377_v14  ;;  %423 = vmatpush1.msra.mxu0 %v376_v15 }
  0x75   :  { %508 = vmatpush1.msra.mxu1 %v376_v15  ;;  %424 = vmatprep.subr.mxu0 %v375_v16 }
  0x76   :  { %509 = vmatprep.subr.mxu1 %v375_v16  ;;  %425 = vmatpush1.msra.mxu0 %v374_v17 }
  0x77   :  { %510 = vmatpush1.msra.mxu1 %v374_v17  ;;  %426 = vmatprep.subr.mxu0 %v373_v18 }
  0x78   :  { %511 = vmatprep.subr.mxu1 %v373_v18  ;;  %427 = vmatpush1.msra.mxu0 %v372_v19 }
  0x79   :  { %512 = vmatpush1.msra.mxu1 %v372_v19  ;;  %428 = vmatprep.subr.mxu0 %v371_v20 }
  0x7a   :  { %513 = vmatprep.subr.mxu1 %v371_v20  ;;  %429 = vmatpush1.msra.mxu0 %v370_v21 }
  0x7b   :  { %514 = vmatpush1.msra.mxu1 %v370_v21  ;;  %430 = vmatprep.subr.mxu0 %v369_v22 }
  0x7c   :  { %515 = vmatprep.subr.mxu1 %v369_v22  ;;  %431 = vmatpush1.msra.mxu0 %v368_v23 }
  0x7d   :  { %516 = vmatpush1.msra.mxu1 %v368_v23  ;;  %432 = vmatprep.subr.mxu0 %v367_v24 }
  0x7e   :  { %517 = vmatprep.subr.mxu1 %v367_v24  ;;  %433 = vmatpush1.msra.mxu0 %v366_v25 }
  0x7f   :  { %518 = vmatpush1.msra.mxu1 %v366_v25  ;;  %434 = vmatprep.subr.mxu0 %v365_v26 }
  0x80   :  { %519 = vmatprep.subr.mxu1 %v365_v26  ;;  %435 = vmatpush1.msra.mxu0 %v364_v27 }
  0x81   :  { %520 = vmatpush1.msra.mxu1 %v364_v27  ;;  %436 = vmatprep.subr.mxu0 %v363_v28 }
  0x82   :  { %521 = vmatprep.subr.mxu1 %v363_v28  ;;  %437 = vmatpush1.msra.mxu0 %v362_v29 }
  0x83   :  { %522 = vmatpush1.msra.mxu1 %v362_v29  ;;  %438 = vmatprep.subr.mxu0 %v361_v30 }
  0x84   :  { %523 = vmatprep.subr.mxu1 %v361_v30  ;;  %439 = vmatpush1.msra.mxu0 %v360_v31 }
  0x85   :  { %524 = vmatpush1.msra.mxu1 %v360_v31  ;;  %440 = vmatprep.subr.mxu0 %v359_v32 }
  0x86   :  { %525 = vmatprep.subr.mxu1 %v359_v32  ;;  %441 = vmatpush1.msra.mxu0 %v358_v33 }
  0x87   :  { %526 = vmatpush1.msra.mxu1 %v358_v33  ;;  %442 = vmatprep.subr.mxu0 %v357_v34 }
  0x88   :  { %527 = vmatprep.subr.mxu1 %v357_v34  ;;  %443 = vmatpush1.msra.mxu0 %v356_v35 }
  0x89   :  { %528 = vmatpush1.msra.mxu1 %v356_v35  ;;  %444 = vmatprep.subr.mxu0 %v355_v36 }
  0x8a   :  { %529 = vmatprep.subr.mxu1 %v355_v36  ;;  %445 = vmatpush1.msra.mxu0 %v354_v37  ;;  %v588_v36 = vlaneseq }
  0x8b   :  { %530 = vmatpush1.msra.mxu1 %v354_v37  ;;  %446 = vmatprep.subr.mxu0 %v353_v38 }
  0x8c   :  { %531 = vmatprep.subr.mxu1 %v353_v38  ;;  %447 = vmatpush1.msra.mxu0 %v352_v39 }
  0x8d   :  { %532 = vmatpush1.msra.mxu1 %v352_v39  ;;  %448 = vmatprep.subr.mxu0 %v415_v40 }
  0x8e   :  { %533 = vmatprep.subr.mxu1 %v415_v40  ;;  %449 = vmatpush2.msra.mxu0 %v414_v41 }
  0x8f   :  { %534 = vmatpush2.msra.mxu1 %v414_v41  ;;  %450 = vmatprep.subr.mxu0 %v413_v42  ;;  %v589_v41 = vshrl.u32 %v588_v36, 7 }
  0x90   :  { %535 = vmatprep.subr.mxu1 %v413_v42  ;;  %451 = vmatpush2.msra.mxu0 %v412_v43 }
  0x91   :  { %536 = vmatpush2.msra.mxu1 %v412_v43  ;;  %452 = vmatprep.subr.mxu0 %v411_v44  ;;  %v590_v42 = vsub.s32 0, %v589_v41  ;;  %v586_v43 = vld [vmem:[%s810_s3] sm:$0x3]  ;;  %s749_s3 = smov [#allocation8]  }
  0x92   :  { %537 = vmatprep.subr.mxu1 %v411_v44  ;;  %453 = vmatpush2.msra.mxu0 %v410_v45  ;;  %v594_v44 = vsub.s32 1, %v589_v41 }
  0x93   :  { %538 = vmatpush2.msra.mxu1 %v410_v45  ;;  %454 = vmatprep.subr.mxu0 %v409_v46  ;;  %v602_v45 = vld [vmem:[%s811_s4] sm:$0x3]  ;;  %s627_s4 = sshll.u32 %s749_s3, 4  ;;  %s628_s4 = int_to_ptr.vmem [resolvable:$true] %s627_s4 }
  0x94   :  { %539 = vmatprep.subr.mxu1 %v409_v46  ;;  %455 = vmatpush2.msra.mxu0 %v408_v47  ;;  %v591_v46 = vrot.slane %v586_v43, %v590_v42  ;;  %s716_s13 = scalar_lea.vmem %s628_s4, 512  ;;  %p721_p2 = scmp.lt.s32.totalorder %s628_s4, %s628_s4 }
  0x95   :  { %540 = vmatpush2.msra.mxu1 %v408_v47  ;;  %456 = vmatprep.subr.mxu0 %v407_v48  ;;  %p717_p1 = scmp.ne.s32.totalorder %s628_s4, %s716_s13  ;;  %p722_p3 = scmp.lt.s32.totalorder %s716_s13, %s716_s13 }
  0x96   :  { %541 = vmatprep.subr.mxu1 %v407_v48  ;;  %457 = vmatpush2.msra.mxu0 %v406_v49 }
  0x97   :  { %542 = vmatpush2.msra.mxu1 %v406_v49  ;;  %458 = vmatprep.subr.mxu0 %v405_v50  ;;  %v595_v49 = vrot.slane %v586_v43, %v594_v44  ;;  %p723_p4 = por %p722_p3, %p721_p2 }
  0x98   :  { %543 = vmatprep.subr.mxu1 %v405_v50  ;;  %459 = vmatpush2.msra.mxu0 %v404_v51  ;;  %v607_v50 = vrot.slane %v602_v45, %v590_v42 }
  0x99   :  { %544 = vmatpush2.msra.mxu1 %v404_v51  ;;  %460 = vmatprep.subr.mxu0 %v403_v52  ;;  %p724_p5 = pnand %p723_p4, %p717_p1 }
  0x9a   :  { %545 = vmatprep.subr.mxu1 %v403_v52  ;;  %461 = vmatpush2.msra.mxu0 %v402_v53 }
  0x9b   :  { %546 = vmatpush2.msra.mxu1 %v402_v53  ;;  %462 = vmatprep.subr.mxu0 %v401_v54 }
  0x9c   :  { %547 = vmatprep.subr.mxu1 %v401_v54  ;;  %463 = vmatpush2.msra.mxu0 %v400_v55  ;;  %v611_v54 = vrot.slane %v602_v45, %v594_v44 }
  0x9d   :  { %548 = vmatpush2.msra.mxu1 %v400_v55  ;;  %464 = vmatprep.subr.mxu0 %v399_v56 }
  0x9e   :  { %549 = vmatprep.subr.mxu1 %v399_v56  ;;  %465 = vmatpush2.msra.mxu0 %v398_v57 }
  0x9f   :  { %550 = vmatpush2.msra.mxu1 %v398_v57  ;;  %466 = vmatprep.subr.mxu0 %v397_v58 }
  0xa0   :  { %551 = vmatprep.subr.mxu1 %v397_v58  ;;  %467 = vmatpush2.msra.mxu0 %v396_v59 }
  0xa1   :  { %552 = vmatpush2.msra.mxu1 %v396_v59  ;;  %468 = vmatprep.subr.mxu0 %v395_v60 }
  0xa2   :  { %553 = vmatprep.subr.mxu1 %v395_v60  ;;  %469 = vmatpush2.msra.mxu0 %v394_v61 }
  0xa3   :  { %554 = vmatpush2.msra.mxu1 %v394_v61  ;;  %470 = vmatprep.subr.mxu0 %v393_v62 }
  0xa4   :  { %555 = vmatprep.subr.mxu1 %v393_v62  ;;  %471 = vmatpush2.msra.mxu0 %v392_v63 }
  0xa5   :  { %556 = vmatpush2.msra.mxu1 %v392_v63  ;;  %472 = vmatprep.subr.mxu0 %v391_v0 }
  0xa6   :  { %557 = vmatprep.subr.mxu1 %v391_v0  ;;  %473 = vmatpush2.msra.mxu0 %v390_v1 }
  0xa7   :  { %558 = vmatpush2.msra.mxu1 %v390_v1  ;;  %474 = vmatprep.subr.mxu0 %v389_v2 }
  0xa8   :  { %559 = vmatprep.subr.mxu1 %v389_v2  ;;  %475 = vmatpush2.msra.mxu0 %v388_v3 }
  0xa9   :  { %560 = vmatpush2.msra.mxu1 %v388_v3  ;;  %476 = vmatprep.subr.mxu0 %v387_v4 }
  0xaa   :  { %561 = vmatprep.subr.mxu1 %v387_v4  ;;  %477 = vmatpush2.msra.mxu0 %v386_v5 }
  0xab   :  { %562 = vmatpush2.msra.mxu1 %v386_v5  ;;  %478 = vmatprep.subr.mxu0 %v385_v6 }
  0xac   :  { %563 = vmatprep.subr.mxu1 %v385_v6  ;;  %479 = vmatpush2.msra.mxu0 %v384_v7 }
  0xad   :  { %564 = vmatpush2.msra.mxu1 %v384_v7 }
 0x12a   :  { %v264_v8 = vpop.f32.mrf.mxu0 }
 0x12b   :  { %v341_v9 = vpop.f32.mrf.mxu1 }
 0x12c   :  { %v266_v10 = vpop.f32.mrf.mxu0  ;;  %v342_v13 = vadd.f32 %v341_v9, %v264_v8 }
 0x12d   :  { %v343_v11 = vpop.f32.mrf.mxu1 }
 0x12e   :  { %v344_v12 = vadd.f32 %v343_v11, %v266_v10  ;;  %v270_v14 = vpop.f32.mrf.mxu0 }
 0x12f   :  { %v347_v15 = vpop.f32.mrf.mxu1 }
 0x130   :  { %480 = vmatprep.mubr.f32.mxu0 %v344_v12  ;;  %v272_v16 = vpop.f32.mrf.mxu0  ;;  %v348_v19 = vadd.f32 %v347_v15, %v270_v14 }
 0x131   :  { %v349_v17 = vpop.f32.mrf.mxu1  ;;  %481 = vmatmul.mubr.f32.vlgmr.msra.gmra.mxu0 %v342_v13 }
 0x132   :  { %v350_v18 = vadd.f32 %v349_v17, %v272_v16 }
 0x134   :  { %486 = vmatprep.mubr.f32.mxu0 %v350_v18 }
 0x135   :  { %487 = vmatmul.mubr.f32.gmra.mxu0 %v348_v19 }
 0x1f1   :  { %v482_v20 = vpop.f32.mrf.mxu0 }
 0x1f2   :  { %v493_v21 = vsub.f32 %v342_v13, %v482_v20 }
 0x1f3   :  { %v484_v22 = vpop.f32.mrf.mxu0 }
 0x1f4   :  { %v494_v23 = vsub.f32 %v344_v12, %v484_v22  ;;  %v497_v26 = vmul.f32 %v493_v21, %v493_v21 }
 0x1f5   :  { %v488_v24 = vpop.f32.mrf.mxu0 }
 0x1f6   :  { %v498_v25 = vmul.f32 %v494_v23, %v494_v23  ;;  %v495_v27 = vsub.f32 %v348_v19, %v488_v24 }
 0x1f7   :  { %v490_v28 = vpop.f32.mrf.mxu0 }
 0x1f8   :  { %v496_v29 = vsub.f32 %v350_v18, %v490_v28  ;;  %565 = vmatprep.mubr.f32.mxu1 %v498_v25  ;;  %v499_v31 = vmul.f32 %v495_v27, %v495_v27 }
 0x1f9   :  { %566 = vmatmul.mubr.f32.vlgmr.msra.gmra.mxu1 %v497_v26 }
 0x1fa   :  { %v500_v30 = vmul.f32 %v496_v29, %v496_v29 }
 0x1fc   :  { %571 = vmatprep.mubr.f32.mxu1 %v500_v30 }
 0x1fd   :  { %572 = vmatmul.mubr.f32.gmra.mxu1 %v499_v31 }
 0x2b9   :  { %v567_v32 = vpop.f32.mrf.mxu1 }
 0x2ba   :  { %v568_v33 = vadd.f32 1e-05, %v567_v32 }
 0x2bb   :  { %v569_v34 = vpop.f32.mrf.mxu1 }
 0x2bc   :  { %648 = vrsqrt.f32 %v568_v33  ;;  %v570_v35 = vadd.f32 1e-05, %v569_v34 }
 0x2bd   :  { %v573_v37 = vpop.f32.mrf.mxu1 }
 0x2be   :  { %650 = vrsqrt.f32 %v570_v35  ;;  %v574_v38 = vadd.f32 1e-05, %v573_v37 }
 0x2bf   :  { %v575_v39 = vpop.f32.mrf.mxu1 }
 0x2c0   :  { %652 = vrsqrt.f32 %v574_v38  ;;  %v576_v40 = vadd.f32 1e-05, %v575_v39 }
 0x2c2   :  { %654 = vrsqrt.f32 %v576_v40 }
 0x2c9   :  { %v649_v47 = vpop.eup %648 }
 0x2ca   :  { %v582_v48 = vmul.f32 %v649_v47, %v493_v21 }
 0x2cb   :  { %v651_v51 = vpop.eup %650 }
 0x2cc   :  { %v583_v52 = vmul.f32 %v651_v51, %v494_v23  ;;  %v598_v53 = vmul.f32 %v591_v46, %v582_v48 }
 0x2cd   :  { %v653_v55 = vpop.eup %652 }
 0x2ce   :  { %v584_v56 = vmul.f32 %v653_v55, %v495_v27  ;;  %v599_v57 = vmul.f32 %v595_v49, %v583_v52  ;;  %v614_v58 = vadd.f32 %v607_v50, %v598_v53 }
 0x2cf   :  { %v655_v59 = vpop.eup %654 }
 0x2d0   :  { %v585_v60 = vmul.f32 %v655_v59, %v496_v29  ;;  %v600_v61 = vmul.f32 %v591_v46, %v584_v56  ;;  %v615_v62 = vadd.f32 %v611_v54, %v599_v57  ;;  %618 = vst [vmem:[#allocation8] sm:$0xff] %v614_v58 }
 0x2d2   :  { %v601_v63 = vmul.f32 %v595_v49, %v585_v60  ;;  %v616_v0 = vadd.f32 %v607_v50, %v600_v61  ;;  %619 = vst [vmem:[#allocation8 + $0x8] sm:$0xff] %v615_v62 }
 0x2d4   :  { %v617_v1 = vadd.f32 %v611_v54, %v601_v63  ;;  %620 = vst [vmem:[#allocation8 + $0x10] sm:$0xff] %v616_v0 }
 0x2d6   :  { %621 = vst [vmem:[#allocation8 + $0x18] sm:$0xff] %v617_v1 }
 0x2d7   :  { %727 = shalt.err (!%p724_p5)
}
 0x2d8   :  { %633 = dma.vmem_to_hbm [thread:$0]  %s628_s4, 512, %s812_s5, [#allocation4], %s743_s21, %s743_s21, %s744_s22  }
 0x2d9   :  { %740 = dma.done.wait [#allocation4], 512  }
 0x2da   :  { %741 = vsyncadd [#allocation4], 4294966784 }
 0x2db   :  { %637 = vsyncpa [#allocation3], 1 }
 0x2dc   :  { %638 = vsyncpa [#allocation6], 1 }
 0x2dd   :  { %639 = vsyncpa [#allocation4], 1 }

</bundles_post_ra>
